<compile_context>
chip_gen: v5e
topology: v5e:2x2
jax: 0.10.0
libtpu: 0.0.40
codegen_flags: <defaults>
</compile_context>

<pallas_src>
import math

import jax
import jax.numpy as jnp
from jax.experimental import pallas as pl
from jax.experimental.pallas import tpu as pltpu


def _to_rgb_kernel(wmod_ref, x_ref, bias_ref, out_ref):
    # wmod_ref: (1, 3, C)    per-batch style-modulated, pre-scaled 1x1 conv weight
    # x_ref:    (1, C, THW)  feature-map tile (flattened spatial, lane-dense)
    # bias_ref: (3, 1)       output bias (f32)
    # out_ref:  (1, 3, THW)
    y = jnp.dot(wmod_ref[0], x_ref[0], preferred_element_type=jnp.float32)
    y = y + bias_ref[...]                     # broadcast (3, 1) over (3, THW)
    out_ref[0] = jnp.maximum(y, 0.2 * y).astype(out_ref.dtype)   # LeakyReLU(0.2)


def _largest_divisor_leq(m, cap):
    """Largest q dividing m with 1 <= q <= cap."""
    cap = max(1, min(m, cap))
    for q in range(cap, 0, -1):
        if m % q == 0:
            return q
    return 1


def to_rgb_pallas(x, w, lin_weight, lin_bias, conv_weight, out_bias,
                  *, max_tile_hw=None):
    """x: (B, C, H, W) NCHW; w: (B, W_DIM). Returns (B, 3, H, W) in x.dtype."""
    B, C, H, W = x.shape
    W_DIM = w.shape[1]
    HW = H * W

    c_lin = 1.0 / math.sqrt(W_DIM)
    c_conv = 1.0 / math.sqrt(C * 1 * 1)

    # --- Hoisted tiny ops (XLA): EqualizedLinear (to_style) and weight modulation.
    style = (w.astype(jnp.float32) @ (lin_weight.astype(jnp.float32) * c_lin).T
             + lin_bias.astype(jnp.float32))                        # (B, C)
    convw = conv_weight[:, :, 0, 0].astype(jnp.float32) * c_conv    # (3, C)
    # Fold style into the tiny conv weight; cast to x dtype so the MXU streams
    # the feature map in its native (possibly bf16) width.
    wmod = (convw[None, :, :] * style[:, None, :]).astype(x.dtype)  # (B, 3, C)
    bias2d = out_bias.reshape(3, 1).astype(jnp.float32)             # (3, 1)

    # --- x stays in native dtype; reshape is free (contiguous), no pad, no cast.
    x_flat = x.reshape(B, C, HW)
    x_it = x_flat.dtype.itemsize
    out_dtype = x.dtype
    out_it = jnp.dtype(out_dtype).itemsize

    # --- VMEM-budgeted, lane-dense spatial tile chosen as a divisor of HW.
    try:
        vmem_cap = int(pltpu.get_tpu_info().vmem_capacity_bytes)
    except Exception:
        vmem_cap = 64 * 1024 * 1024          # conservative fallback (v7x per-TC)
    budget = min((vmem_cap * 3) // 4, 64 * 1024 * 1024)
    # Double-buffered streaming footprint per lane of THW: x tile + out tile.
    bytes_per_lane = 2 * (C * x_it + 3 * out_it)
    thw_cap = max(128, budget // bytes_per_lane)
    if max_tile_hw is not None:
        thw_cap = min(thw_cap, max(128, max_tile_hw))

    if HW % 128 == 0:
        m = HW // 128
        q = _largest_divisor_leq(m, thw_cap // 128)
        # If the whole grid would collapse to a single step, split spatially so
        # dimension_semantics=("parallel","parallel") can feed both v7x cores.
        if B == 1 and HW // (q * 128) == 1 and m >= 2:
            q = _largest_divisor_leq(m, m // 2)
        thw = q * 128
    else:
        thw = HW                              # full-dim block (bypasses 128 rule)
    n_hw = HW // thw

    footprint = (2 * thw * (C * x_it + 3 * out_it)              # x + out, double-buffered
                 + 2 * (3 * C * wmod.dtype.itemsize + 3 * 4))   # wmod + bias
    vmem_limit = int(min(max(int(vmem_cap * 0.95), footprint),
                         footprint + 16 * 1024 * 1024))

    cost = pl.CostEstimate(
        flops=2 * 3 * C * HW * B,
        transcendentals=0,
        bytes_accessed=(B * C * HW * x_it + B * 3 * HW * out_it
                        + B * 3 * C * wmod.dtype.itemsize + 3 * 4),
    )

    out_flat = pl.pallas_call(
        _to_rgb_kernel,
        out_shape=jax.ShapeDtypeStruct((B, 3, HW), out_dtype),
        grid_spec=pltpu.PrefetchScalarGridSpec(
            num_scalar_prefetch=0,
            grid=(B, n_hw),
            in_specs=[
                pl.BlockSpec((1, 3, C), lambda b, t: (b, 0, 0)),     # modulated weight
                pl.BlockSpec((1, C, thw), lambda b, t: (b, 0, t)),   # x tile
                pl.BlockSpec((3, 1), lambda b, t: (0, 0)),           # output bias
            ],
            out_specs=pl.BlockSpec((1, 3, thw), lambda b, t: (b, 0, t)),
        ),
        compiler_params=pltpu.CompilerParams(
            dimension_semantics=("parallel", "parallel"),
            vmem_limit_bytes=vmem_limit,
        ),
        cost_estimate=cost,
    )(wmod, x_flat, bias2d)

    return out_flat.reshape(B, 3, H, W)


def to_rgb_reference(x, w, lin_weight, lin_bias, conv_weight, out_bias):
    """Pure-JAX reference mirroring the PyTorch module exactly."""
    B, C, H, W = x.shape
    W_DIM = w.shape[1]
    c_lin = 1.0 / math.sqrt(W_DIM)
    c_conv = 1.0 / math.sqrt(C * 1 * 1)

    style = w @ (lin_weight * c_lin).T + lin_bias                           # (B, C)
    weights = (conv_weight * c_conv)[None] * style[:, None, :, None, None]  # (B,3,C,1,1)
    y = jnp.einsum("boc,bchw->bohw", weights[:, :, :, 0, 0], x)
    y = y + out_bias[None, :, None, None]
    return jnp.where(y >= 0, y, 0.2 * y)


if __name__ == "__main__":
    key = jax.random.PRNGKey(0)
    k1, k2, k3, k4 = jax.random.split(key, 4)

    B, C, H, W = 2, 4, 16, 16
    W_DIM = 8

    # Inputs
    x = jax.random.normal(k1, (B, C, H, W), dtype=jnp.float32)
    w = jax.random.normal(k2, (B, W_DIM), dtype=jnp.float32)

    # Parameters (deterministic init, matching PyTorch module's shapes)
    lin_weight = jax.random.normal(k3, (C, W_DIM), dtype=jnp.float32)     # EqualizedLinear weight
    lin_bias = jnp.ones((C,), dtype=jnp.float32)                          # bias=1.0
    conv_weight = jax.random.normal(k4, (3, C, 1, 1), dtype=jnp.float32)  # EqualizedWeight [3,C,1,1]
    out_bias = jnp.zeros((3,), dtype=jnp.float32)                         # ToRGB.bias

    out = to_rgb_pallas(x, w, lin_weight, lin_bias, conv_weight, out_bias)
    out = jax.block_until_ready(out)

    ref = to_rgb_reference(x, w, lin_weight, lin_bias, conv_weight, out_bias)
    assert out.shape == (B, 3, H, W)
    assert jnp.allclose(out, ref, atol=1e-5, rtol=1e-5)

    print("KERNEL_OK")
</pallas_src>

<mosaic_0001>
module attributes {stable_mosaic.version = 11 : i64} {
  func.func @_to_rgb_kernel(%arg0: i32, %arg1: i32, %arg2: memref<1x3x4xf32, #tpu.memory_space<vmem>>, %arg3: memref<1x4x256xf32, #tpu.memory_space<vmem>>, %arg4: memref<3x1xf32, #tpu.memory_space<vmem>>, %arg5: memref<1x3x256xf32, #tpu.memory_space<vmem>>) attributes {dimension_semantics = [#tpu.dimension_semantics<parallel>, #tpu.dimension_semantics<parallel>], iteration_bounds = array<i64: 2, 1>, scalar_prefetch = 0 : i64, scratch_operands = 0 : i64, tpu.core_type = #tpu.core_type<tc>, window_params = [{transform_indices = @transform_0, window_bounds = array<i64: 1, 3, 4>}, {transform_indices = @transform_1, window_bounds = array<i64: 1, 4, 256>}, {pipeline_mode = #tpu.pipeline_mode<synchronous>, transform_indices = @transform_2, window_bounds = array<i64: 3, 1>}, {transform_indices = @transform_3, window_bounds = array<i64: 1, 3, 256>}]} {
    %c0 = arith.constant 0 : index
    %c0_0 = arith.constant 0 : index
    %c0_1 = arith.constant 0 : index
    %0 = vector.load %arg2[%c0, %c0_0, %c0_1] : memref<1x3x4xf32, #tpu.memory_space<vmem>>, vector<1x3x4xf32>
    %1 = vector.shape_cast %0 : vector<1x3x4xf32> to vector<3x4xf32>
    %c0_2 = arith.constant 0 : index
    %c0_3 = arith.constant 0 : index
    %c0_4 = arith.constant 0 : index
    %2 = vector.load %arg3[%c0_2, %c0_3, %c0_4] : memref<1x4x256xf32, #tpu.memory_space<vmem>>, vector<1x4x256xf32>
    %3 = vector.shape_cast %2 : vector<1x4x256xf32> to vector<4x256xf32>
    %cst = arith.constant dense<0.000000e+00> : vector<3x256xf32>
    %4 = tpu.matmul %1, %3, %cst {dimension_numbers = #tpu.dot_dimension_numbers<[1], [0], [0], [1], [0, 0, 1, 1], [], []>} : vector<3x4xf32>, vector<4x256xf32>, vector<3x256xf32> -> vector<3x256xf32>
    %c0_5 = arith.constant 0 : index
    %c0_6 = arith.constant 0 : index
    %5 = vector.load %arg4[%c0_5, %c0_6] : memref<3x1xf32, #tpu.memory_space<vmem>>, vector<3x1xf32>
    %6 = vector.broadcast %5 : vector<3x1xf32> to vector<3x256xf32>
    %7 = arith.addf %4, %6 : vector<3x256xf32>
    %cst_7 = arith.constant 2.000000e-01 : f32
    %8 = vector.broadcast %cst_7 : f32 to vector<3x256xf32>
    %9 = arith.mulf %8, %7 : vector<3x256xf32>
    %10 = arith.maximumf %7, %9 : vector<3x256xf32>
    %c0_8 = arith.constant 0 : index
    %c0_9 = arith.constant 0 : index
    %c0_10 = arith.constant 0 : index
    %11 = vector.load %arg5[%c0_8, %c0_9, %c0_10] : memref<1x3x256xf32, #tpu.memory_space<vmem>>, vector<1x3x256xf32>
    %12 = vector.shape_cast %11 : vector<1x3x256xf32> to vector<3x256xf32>
    %13 = vector.shape_cast %10 : vector<3x256xf32> to vector<1x3x256xf32>
    tpu.vector_store %arg5[%c0_8, %c0_9, %c0_10], %13 {strides = array<i32>} : memref<1x3x256xf32, #tpu.memory_space<vmem>>, vector<1x3x256xf32>,
    return
  }
  func.func @transform_0(%arg0: i32, %arg1: i32) -> (i32, i32, i32) {
    %c0_i32 = arith.constant 0 : i32
    %c0_i32_0 = arith.constant 0 : i32
    %c0_i32_1 = arith.constant 0 : i32
    return %arg0, %c0_i32, %c0_i32_0 : i32, i32, i32
  }
  func.func @transform_1(%arg0: i32, %arg1: i32) -> (i32, i32, i32) {
    %c0_i32 = arith.constant 0 : i32
    %c0_i32_0 = arith.constant 0 : i32
    return %arg0, %c0_i32, %arg1 : i32, i32, i32
  }
  func.func @transform_2(%arg0: i32, %arg1: i32) -> (i32, i32) {
    %c0_i32 = arith.constant 0 : i32
    %c0_i32_0 = arith.constant 0 : i32
    %c0_i32_1 = arith.constant 0 : i32
    return %c0_i32, %c0_i32_0 : i32, i32
  }
  func.func @transform_3(%arg0: i32, %arg1: i32) -> (i32, i32, i32) {
    %c0_i32 = arith.constant 0 : i32
    %c0_i32_0 = arith.constant 0 : i32
    return %arg0, %c0_i32, %arg1 : i32, i32, i32
  }
}

</mosaic_0001>

<bundles_post_ra>
// kernel: tpu_custom_call.1
= control target key start
LH: loop header
LB: loop body
LE: loop exit
PB: predicated region body
PF: predicated region fallthrough
CT: control target
= control target key end

     0   :  { %s486_s12 = smov 0   ;;  %s488_s13 = smov 0   ;;  %s528_s0 = inlined_call_operand.vmem [shape: f32[2,3,4], index: 0, kind: input, shape index: {}]   ;;  %s529_s1 = inlined_call_operand.vmem [shape: f32[2,4,256], index: 1, kind: input, shape index: {}]   ;;  %s530_s2 = inlined_call_operand.vmem [shape: f32[3,1], index: 2, kind: input, shape index: {}]   ;;  %s531_s3 = inlined_call_operand.vmem [shape: f32[2,3,256], index: 3, kind: output, shape index: {}]  }
   0x1   :  { %s490_s14 = smov 0  }
   0x2 LB: > { %s25_s15 = sadd.s32 1, %s459_s13  ;;  %p401_p0 = scmp.ge.s32.totalorder %s463_s14, 1  ;;  %s463_s14 = sphi %s490_s14, %s13_s14   ;;  %s459_s13 = sphi %s488_s13, %s533_s13   ;;  %s455_s12 = sphi %s486_s12, %s532_s12  }
   0x3   : > { %p27_p1 = scmp.ge.s32.totalorder %s25_s15, 2  ;;  %p167_p2 = scmp.lt.s32.totalorder %s463_s14, 3 }
   0x5   : > { %s535_s15 = smov (%p27_p1, %s25_s15), 0  ;;  %p168_p3 = pnand %p401_p0, %p167_p2 }
   0x6   : > { %p203_p4 = scmp.lt.s32.totalorder (!%p168_p3), %s455_s12, 1 }
   0x7   : > { %171 = sbr.rel (%p168_p3) target bundleno = 161 (0xa1), region = 32 }
   0xc   : > { %v229_v0 = vld [vmem:[%s530_s2] sm:$0x7]  ;;  %v465_v1 = vmov 0   ;;  %s537_s12 = smov (!%p203_p4, %s455_s12), 1  ;;  %vm243_vm0 = vcmask 1043456   ;;  %vm239_vm1 = vcmask 31744  }
   0xd   : > { %440 = vset.pattern.permute.xlu0 %v465_v1  ;;  %s413_s18 = sshll.u32 %s537_s12, 3  ;;  %s402_s22 = sshll.u32 %s537_s12, 2 }
   0xe   : > { %232 = vperm.xlu0 %440, %v229_v0   ;;  %s215_s21 = scalar_lea.vmem %s529_s1, %s413_s18  ;;  %s206_s25 = scalar_lea.vmem %s528_s0, %s402_s22 }
   0xf   : > { %v228_v2 = vld [vmem:[%s215_s21] sm:$0xff]  ;;  %s225_s28 = scalar_lea.vmem %s531_s3, %s413_s18 }
  0x10   : > { %236 = vst [vmem:[#allocation1] ss:$2 sm:$0xff] %v228_v2  ;;  %v227_v3 = vld [vmem:[%s206_s25] sm:$0x7] }
  0x17   : > { %v237_v4 = vld.sshfl [vmem:[#allocation1] sm:$0xff pattern:$0x75316420]  ;;  %v238_v5 = vld.sshfl [vmem:[#allocation1 + $0x8] sm:$0xff pattern:$0x75316420] }
  0x18   : > { %407 = vmatpush.msk.msra.mxu0 %vm243_vm0, %v237_v4  ;;  %409 = vmatpush.msk.msra.mxu1 %vm243_vm0, %v238_v5 }
  0x19   : > { %408 = vmatmul.msk.f32.vlgmr.msra.gmra.mxu0 %vm239_vm1, %v227_v3  ;;  %410 = vmatmul.msk.f32.vlgmr.msra.gmra.mxu1 %vm239_vm1, %v227_v3 }
  0x80   : > { %v233_v6 = vpop.permute.xlu0 %232 }
  0x96   : > { %v265_v7 = vpop.f32.mrf.mxu0  ;;  %v285_v8 = vpop.f32.mrf.mxu1 }
  0x97   : > { %v266_v9 = vadd.f32 %v265_v7, %v233_v6  ;;  %v286_v10 = vadd.f32 %v285_v8, %v233_v6 }
  0x99   : > { %v288_v11 = vmul.f32 0.2, %v266_v9  ;;  %v289_v12 = vmul.f32 0.2, %v286_v10 }
  0x9b   : > { %v291_v13 = vmax.f32 %v286_v10, %v289_v12  ;;  %v290_v14 = vmax.f32 %v266_v9, %v288_v11 }
  0x9d   : > { %v294_v15 = vrot.slane %v291_v13, 4 }
  0x9f   : > { %v295_v16 = vsel %vm243_vm0, %v290_v14, %v294_v15 }
  0xa0   : > { %297 = vst [vmem:[%s225_s28] sm:$0x77] %v295_v16 }
  0xa1 PF: > { %s13_s14 = sadd.s32 1, %s463_s14   ;;  %s532_s12 = smov %s459_s13 }
  0xa2   : > { %p10_p5 = scmp.ge.s32.totalorder %s13_s14, 4   ;;  %s533_s13 = smov %s535_s15 }
  0xa4   :  { %12 = sbr.rel (!%p10_p5) target bundleno = 2 (0x2), region = 65 }

</bundles_post_ra>
